<compile_context>
chip_gen: v7x
topology: tpu7x:2x2x1
jax: 0.10.0
libtpu: 0.0.40
codegen_flags: <defaults>
</compile_context>

<pallas_src>
import math
from functools import partial

import numpy as np
import jax
import jax.numpy as jnp
from jax.experimental import pallas as pl
from jax.experimental.pallas import tpu as pltpu


_SQRT1_2 = 0.7071067811865476
# MXU operand dtype (accumulation is always f32 via preferred_element_type).
# Set to jnp.float32 for bit-level parity with PyTorch f32 Conv2d/Linear.
_MATMUL_DTYPE = jnp.bfloat16


# ----------------------------------------------------------------------------
# elementwise helpers
# ----------------------------------------------------------------------------
def _erf_approx(x):
    # A&S 7.1.26 rational approximation (|err| < 1.5e-7 ~ f32 eps).  The divide is moved onto
    # the EUP slot via pl.reciprocal(approx=True); the exp is already EUP, so the VALU cost of
    # the GELU epilogue drops (matters most on v5e, which has no bf16 VPU and 1 store slot).
    a1, a2, a3, a4, a5 = 0.254829592, -0.284496736, 1.421413741, -1.453152027, 1.061405429
    pp = 0.3275911
    s = jnp.where(x >= 0.0, 1.0, -1.0)
    ax = jnp.abs(x)
    t = pl.reciprocal(1.0 + pp * ax, approx=True)
    poly = ((((a5 * t + a4) * t + a3) * t + a2) * t + a1) * t
    return s * (1.0 - poly * jnp.exp(-ax * ax))


def _gelu(x):
    # erf-based GELU (torch.nn.GELU() default, up to the erf approximation above)
    return 0.5 * x * (1.0 + _erf_approx(x * _SQRT1_2))


# ----------------------------------------------------------------------------
# Kernel 1: NeRVBlock conv stage.  The padded image tile is resident in VMEM (single HBM read);
# im2col happens in-kernel as ks*ks shifted dots against row-slices of conv_w (f32 accumulation),
# fused with the GELU.  Output (H*W, Cout=128) is lane-dense.
# ----------------------------------------------------------------------------
def conv_act_kernel(xp_ref, w_ref, b_ref, o_ref, *, H, W, ks):
    # xp_ref: (1, H+2p, W+2p, Cin) f32   w_ref: (ks*ks*Cin, Cout) bf16   b_ref: (1, Cout) f32
    # o_ref : (1, H*W, Cout) f32  (Cout = new_ngf*stride^2 = 128 -> unmasked full-width stores)
    img = xp_ref[0]
    Cin = img.shape[-1]
    Cout = w_ref.shape[-1]
    acc = jnp.zeros((H * W, Cout), jnp.float32)
    for dh in range(ks):                              # fully unrolled, static trip count
        for dw in range(ks):
            patch = img[dh:dh + H, dw:dw + W, :].reshape(H * W, Cin).astype(_MATMUL_DTYPE)
            tap = dh * ks + dw
            wrow = w_ref[tap * Cin:(tap + 1) * Cin, :]        # aligned static row-slice
            acc = acc + jnp.dot(patch, wrow, preferred_element_type=jnp.float32)
    o_ref[0] = _gelu(acc + b_ref[0])


def conv_act(xp, w, b, *, H, W, ks):
    B, Hp, Wp, Cin = xp.shape
    K, Cout = w.shape
    M = H * W
    cost = pl.CostEstimate(
        flops=2 * B * M * K * Cout,
        transcendentals=B * M * Cout,
        bytes_accessed=(B * Hp * Wp * Cin * xp.dtype.itemsize
                        + K * Cout * w.dtype.itemsize + Cout * 4 + B * M * Cout * 4),
    )
    return pl.pallas_call(
        partial(conv_act_kernel, H=H, W=W, ks=ks),
        out_shape=jax.ShapeDtypeStruct((B, M, Cout), jnp.float32),
        # Multi-step grid over the batch (megacore-shardable).  At real NeRV resolutions tile
        # the M axis further into 256-512 row blocks (BlockSpec double-buffers them) instead of
        # one full image per step.
        grid=(B,),
        in_specs=[
            pl.BlockSpec((1, Hp, Wp, Cin), lambda i: (i, 0, 0, 0)),
            pl.BlockSpec((K, Cout), lambda i: (0, 0)),      # grid-invariant -> stays resident
            pl.BlockSpec((1, Cout), lambda i: (0, 0)),
        ],
        out_specs=pl.BlockSpec((1, M, Cout), lambda i: (i, 0, 0)),
        compiler_params=pltpu.CompilerParams(
            dimension_semantics=("parallel",),
            vmem_limit_bytes=32 * 1024 * 1024),
        cost_estimate=cost,
    )(xp, w, b)


# ----------------------------------------------------------------------------
# Kernel 2: fused SFTLayer + LayerNorm(channels_first) + FeedForward + residuals.
# Batch-parallel grid; no padded scratch (shift-with-zero-strip depthwise); lane-dense store.
# ----------------------------------------------------------------------------
def sft_ffn_kernel(xa_ref, e_ref,
                   wsft0, bsft0, wsft1, bsft1,
                   lnw, lnb, wpi, bpi, wdw, bdw, wpo, bpo,
                   y_ref, *, Hs, Ws, C, eps):
    C2 = 2 * C
    N1 = Hs * Ws
    x = xa_ref[0]                                     # (N1, C) f32, post conv/shuffle/act
    e = e_ref[0]                                      # (N1, Ce) bf16

    # ---- SFTLayer, both branches fused: hidden = [scale_hid | shift_hid], block-diagonal
    #      second 1x1 conv so one matmul yields [scale | shift] ----
    h = jnp.dot(e, wsft0[...], preferred_element_type=jnp.float32) + bsft0[0]
    h = jnp.maximum(h, 0.0)
    ss = jnp.dot(h.astype(_MATMUL_DTYPE), wsft1[...],
                 preferred_element_type=jnp.float32) + bsft1[0]          # (N1, 2C)
    fea = x * (ss[:, :C] + 1.0) + ss[:, C:]

    # ---- LayerNorm over the channel axis (channels_first in NCHW == last axis here, biased var) ----
    u = jnp.mean(fea, axis=-1, keepdims=True)
    var = jnp.mean((fea - u) ** 2, axis=-1, keepdims=True)
    xn = (fea - u) * jax.lax.rsqrt(var + eps) * lnw[0] + lnb[0]

    # ---- FeedForward project_in: both chunk(2, dim=1) halves in a single (C, 2C) matmul ----
    t = jnp.dot(xn.astype(_MATMUL_DTYPE), wpi[...],
                preferred_element_type=jnp.float32) + bpi[0]             # (N1, 2C)

    # ---- 3x3 depthwise conv (padding 1), both halves fused (2C lanes).  Shifted slices with
    #      zero strips: no padded VMEM scratch, no full-buffer zeroing, no misaligned interior
    #      store -- the shifts are slice/concat work and each tap is one VPU madd. ----
    t4 = t.reshape(Hs, Ws, C2)
    zrow = jnp.zeros((1, Ws, C2), jnp.float32)
    zcol = jnp.zeros((Hs, 1, C2), jnp.float32)
    d = jnp.zeros((Hs, Ws, C2), jnp.float32) + bdw[0]
    for i in range(3):                                # fully unrolled
        if i == 0:
            band = jnp.concatenate([zrow, t4[:Hs - 1]], axis=0)
        elif i == 1:
            band = t4
        else:
            band = jnp.concatenate([t4[1:], zrow], axis=0)
        for j in range(3):
            if j == 0:
                tap = jnp.concatenate([zcol, band[:, :Ws - 1]], axis=1)
            elif j == 1:
                tap = band
            else:
                tap = jnp.concatenate([band[:, 1:], zcol], axis=1)
            d = d + tap * wdw[i * 3 + j]

    # ---- gated GELU, project_out, FFN residual (+fea), ResBlock residual (+x) ----
    g = (_gelu(d[..., :C]) * d[..., C:]).reshape(N1, C)
    out = jnp.dot(g.astype(_MATMUL_DTYPE), wpo[...],
                  preferred_element_type=jnp.float32) + bpo[0]
    y = x + out + fea

    # ---- lane-dense store: pack (N1, C=32) into (N1/G, 128) by concatenating G contiguous
    #      row-groups along the lane axis -> unmasked full-width vst instead of 32-lane vst.msk.
    #      The wrapper inverts this pure permutation with free XLA reshape/transpose plumbing. ----
    G = 128 // C
    Nq = N1 // G
    y_ref[0] = jnp.concatenate([y[q * Nq:(q + 1) * Nq, :] for q in range(G)], axis=-1)


def sft_ffn(xa, e, weights, *, Hs, Ws, eps=1e-5):
    B, N1, C = xa.shape
    Ce = e.shape[-1]
    G = 128 // C
    assert 128 % C == 0 and N1 % G == 0, "lane-dense packing needs C | 128 and G | N1"
    Nq = N1 // G
    kern = partial(sft_ffn_kernel, Hs=Hs, Ws=Ws, C=C, eps=eps)

    def wspec(a):
        nd = a.ndim
        # Grid-invariant index_map: the 12 small weight tensors are fetched once and stay
        # resident across the batch grid.  (Single-buffering them -- pipeline_mode=pl.Buffered(1)
        # -- is the next knob inside v7x's 64 MiB VMEM once the activation tiles get large.)
        return pl.BlockSpec(a.shape, lambda i, _nd=nd: (0,) * _nd)

    wbytes = sum(int(np.prod(a.shape)) * a.dtype.itemsize for a in weights)
    flops_row = 2 * (Ce * 2 * Ce + 2 * Ce * 2 * C + C * 2 * C + C * C) + 2 * 9 * 2 * C + 30 * C
    cost = pl.CostEstimate(
        flops=B * N1 * flops_row,
        transcendentals=B * N1 * (2 * C + 4),
        bytes_accessed=(B * N1 * C * 4 + B * N1 * Ce * e.dtype.itemsize + wbytes + B * N1 * C * 4),
    )

    args = [xa, e] + list(weights)
    y_pk = pl.pallas_call(
        kern,
        out_shape=jax.ShapeDtypeStruct((B, Nq, 128), jnp.float32),
        # Batch-parallel grid (2 steps here -> one per v7x TensorCore).  At real resolutions,
        # tile additionally over row blocks with a 1-row halo for the depthwise conv and
        # re-derive vmem_limit_bytes so block + weights stay well under the per-TC budget.
        grid=(B,),
        in_specs=[pl.BlockSpec((1, N1, C), lambda i: (i, 0, 0)),
                  pl.BlockSpec((1, N1, Ce), lambda i: (i, 0, 0))]
                 + [wspec(a) for a in weights],
        out_specs=pl.BlockSpec((1, Nq, 128), lambda i: (i, 0, 0)),
        compiler_params=pltpu.CompilerParams(
            dimension_semantics=("parallel",),
            vmem_limit_bytes=32 * 1024 * 1024),
        cost_estimate=cost,
    )(*args)
    # undo the lane-dense packing: (B, Nq, G*C) -> (B, G, Nq, C) -> (B, N1, C)
    y = y_pk.reshape(B, Nq, G, C).transpose(0, 2, 1, 3).reshape(B, N1, C)
    return y


# ----------------------------------------------------------------------------
# plain-JAX glue: PyTorch-exact bicubic (align_corners=False, a=-0.75) as separable matmuls
# ----------------------------------------------------------------------------
def bicubic_matrix(n_in, k):
    n_out = n_in * k
    A = -0.75

    def w1(x):   # |x| <= 1
        return ((A + 2.0) * x - (A + 3.0)) * x * x + 1.0

    def w2(x):   # 1 < |x| < 2
        return ((A * x - 5.0 * A) * x + 8.0 * A) * x - 4.0 * A

    M = np.zeros((n_out, n_in), dtype=np.float64)
    for o in range(n_out):
        src = (o + 0.5) / k - 0.5
        f = math.floor(src)
        t = src - f
        ws = [w2(t + 1.0), w1(t), w1(1.0 - t), w2(2.0 - t)]
        for tap, wv in zip(range(f - 1, f + 3), ws):
            idx = min(max(tap, 0), n_in - 1)   # border replicate, as in PyTorch bicubic
            M[o, idx] += wv
    return jnp.asarray(M, dtype=jnp.float32)


# ----------------------------------------------------------------------------
# module forward: (x0_NCHW, embed_NCHW) -> (y_NCHW, embed_up_NCHW, x_NCHW)
# ----------------------------------------------------------------------------
def harmonic_nerv_block(x0, embed, params, *, stride, ks, k):
    B, Cin, H, W = x0.shape
    pad = (ks - 1) // 2   # == ceil((ks - 1) // 2) used by the PyTorch UpConv ('pshuffel') branch

    # --- NeRVBlock: ks x ks conv -> PixelShuffle -> Identity norm -> GELU.
    #     The padded NHWC input is the ONLY conv-stage HBM read; im2col happens in-kernel
    #     (no 9x expanded slab in HBM).  GELU commutes with PixelShuffle, so it is fused in
    #     the conv kernel and the shuffle stays a pure permutation here. ---
    x_nhwc = jnp.transpose(x0, (0, 2, 3, 1))
    xp = jnp.pad(x_nhwc, ((0, 0), (pad, pad), (pad, pad), (0, 0)))
    conv_out = conv_act(xp, params["conv_w"], params["conv_b"], H=H, W=W, ks=ks)   # (B,H*W,128)

    r = stride
    Cout = conv_out.shape[-1]
    C = Cout // (r * r)
    t = conv_out.reshape(B, H, W, C, r, r)
    x_act = jnp.transpose(t, (0, 1, 4, 2, 5, 3)).reshape(B, H * r, W * r, C)
    Hs, Ws = H * r, W * r

    # --- bicubic upsample of embed by k (exact separable matmuls; embed_up is a module output) ---
    He, We = embed.shape[2], embed.shape[3]
    Mh = bicubic_matrix(He, k)
    Mw = bicubic_matrix(We, k)
    e_up = jnp.einsum("oh,bchw->bcow", Mh, embed)
    e_up = jnp.einsum("pw,bcow->bcop", Mw, e_up)                        # (B, Ce, He*k, We*k) NCHW
    e_flat = jnp.transpose(e_up, (0, 2, 3, 1)).reshape(B, Hs * Ws, -1).astype(_MATMUL_DTYPE)

    # --- fused SFT + LayerNorm + FFN + residuals (Pallas kernel 2, batch-parallel grid) ---
    # TODO(synk): feed conv_out straight into kernel 2 and fold the PixelShuffle into its xa
    #             access to drop one HBM read of the channels-last activation; kept as XLA
    #             plumbing because x_act must be materialized as a module output anyway.
    xa = x_act.reshape(B, Hs * Ws, C)
    y_flat = sft_ffn(xa, e_flat, params["sft_ffn"], Hs=Hs, Ws=Ws)

    y = jnp.transpose(y_flat.reshape(B, Hs, Ws, C), (0, 3, 1, 2))
    x_out = jnp.transpose(x_act, (0, 3, 1, 2))
    return y, e_up, x_out


# ----------------------------------------------------------------------------
# deterministic parameter init (shapes follow the module's __init__; synthetic values),
# producing the fused / kernel-ready weight layouts.
# ----------------------------------------------------------------------------
def init_params(key, ngf, new_ngf, stride, ks, cond_ch):
    keys = jax.random.split(key, 16)

    def nrm(kk, shape, s=0.1):
        return jax.random.normal(kk, shape, jnp.float32) * s

    C = new_ngf
    cout = new_ngf * stride * stride

    # main conv: PyTorch weight (cout, ngf, ks, ks) -> im2col layout (ks*ks*ngf, cout)
    w = nrm(keys[0], (cout, ngf, ks, ks))
    conv_w = jnp.transpose(w, (2, 3, 1, 0)).reshape(ks * ks * ngf, cout).astype(_MATMUL_DTYPE)
    conv_b = nrm(keys[1], (cout,)).reshape(1, cout)

    # SFTLayer 1x1 convs, (Cin, Cout) weights + (1, Cout) biases; fuse scale/shift branches
    wsc0 = nrm(keys[2], (cond_ch, cond_ch)); bsc0 = nrm(keys[3], (1, cond_ch))
    wsc1 = nrm(keys[4], (cond_ch, C));       bsc1 = nrm(keys[5], (1, C))
    wsh0 = nrm(keys[6], (cond_ch, cond_ch)); bsh0 = nrm(keys[7], (1, cond_ch))
    wsh1 = nrm(keys[8], (cond_ch, C));       bsh1 = nrm(keys[9], (1, C))
    w_sft0 = jnp.concatenate([wsc0, wsh0], axis=1).astype(_MATMUL_DTYPE)        # (Ce, 2Ce)
    b_sft0 = jnp.concatenate([bsc0, bsh0], axis=1)                              # (1, 2Ce)
    z = jnp.zeros((cond_ch, C), jnp.float32)
    w_sft1 = jnp.concatenate(                                                   # block-diag (2Ce, 2C)
        [jnp.concatenate([wsc1, z], axis=1),
         jnp.concatenate([z, wsh1], axis=1)], axis=0).astype(_MATMUL_DTYPE)
    b_sft1 = jnp.concatenate([bsc1, bsh1], axis=1)                              # (1, 2C)

    # FeedForward (dim = new_ngf, hidden = dim since ffn_expansion_factor = 1)
    lnw = jnp.ones((1, C), jnp.float32)
    lnb = jnp.zeros((1, C), jnp.float32)
    hid = C
    w_pi = nrm(keys[10], (C, 2 * hid)).astype(_MATMUL_DTYPE)   # project_in, both chunk halves
    b_pi = nrm(keys[11], (1, 2 * hid))

    # depthwise 3x3: PyTorch (2*hid, 1, 3, 3) -> (9, 2*hid), both halves kept fused
    wdw = nrm(keys[12], (2 * hid, 1, 3, 3))
    w_dw = jnp.transpose(wdw[:, 0], (1, 2, 0)).reshape(9, 2 * hid)
    b_dw = nrm(keys[13], (1, 2 * hid))

    w_po = nrm(keys[14], (hid, C)).astype(_MATMUL_DTYPE)
    b_po = nrm(keys[15], (1, C))

    sft_ffn_weights = [w_sft0, b_sft0, w_sft1, b_sft1, lnw, lnb,
                       w_pi, b_pi, w_dw, b_dw, w_po, b_po]
    return dict(conv_w=conv_w, conv_b=conv_b, sft_ffn=sft_ffn_weights)


# ----------------------------------------------------------------------------
if __name__ == "__main__":
    # module hyper-params: ngf=8, new_ngf=32, strd=2, ks=3, k=2, act='gelu', cond_ch=32
    B, ngf, H, W = 2, 8, 8, 8
    new_ngf, stride, ks, k = 32, 2, 3, 2
    cond_ch = 32

    root = jax.random.PRNGKey(0)
    kx, ke, kw = jax.random.split(root, 3)
    x0 = jax.random.normal(kx, (B, ngf, H, W), jnp.float32)          # x[0], NCHW
    embed = jax.random.normal(ke, (B, cond_ch, H, W), jnp.float32)   # x[1], NCHW
    params = init_params(kw, ngf, new_ngf, stride, ks, cond_ch)

    y, embed_up, x_act = harmonic_nerv_block(x0, embed, params, stride=stride, ks=ks, k=k)
    jax.block_until_ready((y, embed_up, x_act))

    assert y.shape == (B, new_ngf, H * stride, W * stride)
    assert embed_up.shape == (B, cond_ch, H * k, W * k)
    assert x_act.shape == (B, new_ngf, H * stride, W * stride)
    assert bool(jnp.all(jnp.isfinite(y))) and bool(jnp.all(jnp.isfinite(embed_up)))

    print("KERNEL_OK")
</pallas_src>

<mosaic_0001>
module attributes {stable_mosaic.version = 11 : i64} {
  func.func @conv_act_kernel(%arg0: i32, %arg1: memref<1x10x10x8xf32, #tpu.memory_space<vmem>>, %arg2: memref<72x128xbf16, #tpu.memory_space<vmem>>, %arg3: memref<1x128xf32, #tpu.memory_space<vmem>>, %arg4: memref<1x64x128xf32, #tpu.memory_space<vmem>>) attributes {dimension_semantics = [#tpu.dimension_semantics<parallel>], iteration_bounds = array<i64: 2>, scalar_prefetch = 0 : i64, scratch_operands = 0 : i64, tpu.core_type = #tpu.core_type<tc>, window_params = [{transform_indices = @transform_0, window_bounds = array<i64: 1, 10, 10, 8>}, {pipeline_mode = #tpu.pipeline_mode<synchronous>, transform_indices = @transform_1, window_bounds = array<i64: 72, 128>}, {pipeline_mode = #tpu.pipeline_mode<synchronous>, transform_indices = @transform_2, window_bounds = array<i64: 1, 128>}, {transform_indices = @transform_3, window_bounds = array<i64: 1, 64, 128>}]} {
    %c0 = arith.constant 0 : index
    %c0_0 = arith.constant 0 : index
    %c0_1 = arith.constant 0 : index
    %c0_2 = arith.constant 0 : index
    %0 = vector.load %arg1[%c0, %c0_0, %c0_1, %c0_2] : memref<1x10x10x8xf32, #tpu.memory_space<vmem>>, vector<1x10x10x8xf32>
    %1 = vector.shape_cast %0 : vector<1x10x10x8xf32> to vector<10x10x8xf32>
    %cst = arith.constant 0.000000e+00 : f32
    %2 = vector.broadcast %cst : f32 to vector<64x128xf32>
    %3 = vector.extract_strided_slice %1 {offsets = [0, 0, 0], sizes = [8, 8, 8], strides = [1, 1, 1]} : vector<10x10x8xf32> to vector<8x8x8xf32>
    %4 = vector.shape_cast %3 : vector<8x8x8xf32> to vector<64x8xf32>
    %5 = arith.truncf %4 : vector<64x8xf32> to vector<64x8xbf16>
    %c0_3 = arith.constant 0 : index
    %c0_4 = arith.constant 0 : index
    %6 = vector.load %arg2[%c0_3, %c0_4] : memref<72x128xbf16, #tpu.memory_space<vmem>>, vector<8x128xbf16>
    %cst_5 = arith.constant dense<0.000000e+00> : vector<64x128xf32>
    %7 = tpu.matmul %5, %6, %cst_5 {dimension_numbers = #tpu.dot_dimension_numbers<[1], [0], [0], [1], [0, 0, 1, 1], [], []>} : vector<64x8xbf16>, vector<8x128xbf16>, vector<64x128xf32> -> vector<64x128xf32>
    %8 = arith.addf %2, %7 : vector<64x128xf32>
    %9 = vector.extract_strided_slice %1 {offsets = [0, 1, 0], sizes = [8, 8, 8], strides = [1, 1, 1]} : vector<10x10x8xf32> to vector<8x8x8xf32>
    %10 = vector.shape_cast %9 : vector<8x8x8xf32> to vector<64x8xf32>
    %11 = arith.truncf %10 : vector<64x8xf32> to vector<64x8xbf16>
    %c8 = arith.constant 8 : index
    %c0_6 = arith.constant 0 : index
    %12 = vector.load %arg2[%c8, %c0_6] : memref<72x128xbf16, #tpu.memory_space<vmem>>, vector<8x128xbf16>
    %cst_7 = arith.constant dense<0.000000e+00> : vector<64x128xf32>
    %13 = tpu.matmul %11, %12, %cst_7 {dimension_numbers = #tpu.dot_dimension_numbers<[1], [0], [0], [1], [0, 0, 1, 1], [], []>} : vector<64x8xbf16>, vector<8x128xbf16>, vector<64x128xf32> -> vector<64x128xf32>
    %14 = arith.addf %8, %13 : vector<64x128xf32>
    %15 = vector.extract_strided_slice %1 {offsets = [0, 2, 0], sizes = [8, 8, 8], strides = [1, 1, 1]} : vector<10x10x8xf32> to vector<8x8x8xf32>
    %16 = vector.shape_cast %15 : vector<8x8x8xf32> to vector<64x8xf32>
    %17 = arith.truncf %16 : vector<64x8xf32> to vector<64x8xbf16>
    %c16 = arith.constant 16 : index
    %c0_8 = arith.constant 0 : index
    %18 = vector.load %arg2[%c16, %c0_8] : memref<72x128xbf16, #tpu.memory_space<vmem>>, vector<8x128xbf16>
    %cst_9 = arith.constant dense<0.000000e+00> : vector<64x128xf32>
    %19 = tpu.matmul %17, %18, %cst_9 {dimension_numbers = #tpu.dot_dimension_numbers<[1], [0], [0], [1], [0, 0, 1, 1], [], []>} : vector<64x8xbf16>, vector<8x128xbf16>, vector<64x128xf32> -> vector<64x128xf32>
    %20 = arith.addf %14, %19 : vector<64x128xf32>
    %21 = vector.extract_strided_slice %1 {offsets = [1, 0, 0], sizes = [8, 8, 8], strides = [1, 1, 1]} : vector<10x10x8xf32> to vector<8x8x8xf32>
    %22 = vector.shape_cast %21 : vector<8x8x8xf32> to vector<64x8xf32>
    %23 = arith.truncf %22 : vector<64x8xf32> to vector<64x8xbf16>
    %c24 = arith.constant 24 : index
    %c0_10 = arith.constant 0 : index
    %24 = vector.load %arg2[%c24, %c0_10] : memref<72x128xbf16, #tpu.memory_space<vmem>>, vector<8x128xbf16>
    %cst_11 = arith.constant dense<0.000000e+00> : vector<64x128xf32>
    %25 = tpu.matmul %23, %24, %cst_11 {dimension_numbers = #tpu.dot_dimension_numbers<[1], [0], [0], [1], [0, 0, 1, 1], [], []>} : vector<64x8xbf16>, vector<8x128xbf16>, vector<64x128xf32> -> vector<64x128xf32>
    %26 = arith.addf %20, %25 : vector<64x128xf32>
    %27 = vector.extract_strided_slice %1 {offsets = [1, 1, 0], sizes = [8, 8, 8], strides = [1, 1, 1]} : vector<10x10x8xf32> to vector<8x8x8xf32>
    %28 = vector.shape_cast %27 : vector<8x8x8xf32> to vector<64x8xf32>
    %29 = arith.truncf %28 : vector<64x8xf32> to vector<64x8xbf16>
    %c32 = arith.constant 32 : index
    %c0_12 = arith.constant 0 : index
    %30 = vector.load %arg2[%c32, %c0_12] : memref<72x128xbf16, #tpu.memory_space<vmem>>, vector<8x128xbf16>
    %cst_13 = arith.constant dense<0.000000e+00> : vector<64x128xf32>
    %31 = tpu.matmul %29, %30, %cst_13 {dimension_numbers = #tpu.dot_dimension_numbers<[1], [0], [0], [1], [0, 0, 1, 1], [], []>} : vector<64x8xbf16>, vector<8x128xbf16>, vector<64x128xf32> -> vector<64x128xf32>
    %32 = arith.addf %26, %31 : vector<64x128xf32>
    %33 = vector.extract_strided_slice %1 {offsets = [1, 2, 0], sizes = [8, 8, 8], strides = [1, 1, 1]} : vector<10x10x8xf32> to vector<8x8x8xf32>
    %34 = vector.shape_cast %33 : vector<8x8x8xf32> to vector<64x8xf32>
    %35 = arith.truncf %34 : vector<64x8xf32> to vector<64x8xbf16>
    %c40 = arith.constant 40 : index
    %c0_14 = arith.constant 0 : index
    %36 = vector.load %arg2[%c40, %c0_14] : memref<72x128xbf16, #tpu.memory_space<vmem>>, vector<8x128xbf16>
    %cst_15 = arith.constant dense<0.000000e+00> : vector<64x128xf32>
    %37 = tpu.matmul %35, %36, %cst_15 {dimension_numbers = #tpu.dot_dimension_numbers<[1], [0], [0], [1], [0, 0, 1, 1], [], []>} : vector<64x8xbf16>, vector<8x128xbf16>, vector<64x128xf32> -> vector<64x128xf32>
    %38 = arith.addf %32, %37 : vector<64x128xf32>
    %39 = vector.extract_strided_slice %1 {offsets = [2, 0, 0], sizes = [8, 8, 8], strides = [1, 1, 1]} : vector<10x10x8xf32> to vector<8x8x8xf32>
    %40 = vector.shape_cast %39 : vector<8x8x8xf32> to vector<64x8xf32>
    %41 = arith.truncf %40 : vector<64x8xf32> to vector<64x8xbf16>
    %c48 = arith.constant 48 : index
    %c0_16 = arith.constant 0 : index
    %42 = vector.load %arg2[%c48, %c0_16] : memref<72x128xbf16, #tpu.memory_space<vmem>>, vector<8x128xbf16>
    %cst_17 = arith.constant dense<0.000000e+00> : vector<64x128xf32>
    %43 = tpu.matmul %41, %42, %cst_17 {dimension_numbers = #tpu.dot_dimension_numbers<[1], [0], [0], [1], [0, 0, 1, 1], [], []>} : vector<64x8xbf16>, vector<8x128xbf16>, vector<64x128xf32> -> vector<64x128xf32>
    %44 = arith.addf %38, %43 : vector<64x128xf32>
    %45 = vector.extract_strided_slice %1 {offsets = [2, 1, 0], sizes = [8, 8, 8], strides = [1, 1, 1]} : vector<10x10x8xf32> to vector<8x8x8xf32>
    %46 = vector.shape_cast %45 : vector<8x8x8xf32> to vector<64x8xf32>
    %47 = arith.truncf %46 : vector<64x8xf32> to vector<64x8xbf16>
    %c56 = arith.constant 56 : index
    %c0_18 = arith.constant 0 : index
    %48 = vector.load %arg2[%c56, %c0_18] : memref<72x128xbf16, #tpu.memory_space<vmem>>, vector<8x128xbf16>
    %cst_19 = arith.constant dense<0.000000e+00> : vector<64x128xf32>
    %49 = tpu.matmul %47, %48, %cst_19 {dimension_numbers = #tpu.dot_dimension_numbers<[1], [0], [0], [1], [0, 0, 1, 1], [], []>} : vector<64x8xbf16>, vector<8x128xbf16>, vector<64x128xf32> -> vector<64x128xf32>
    %50 = arith.addf %44, %49 : vector<64x128xf32>
    %51 = vector.extract_strided_slice %1 {offsets = [2, 2, 0], sizes = [8, 8, 8], strides = [1, 1, 1]} : vector<10x10x8xf32> to vector<8x8x8xf32>
    %52 = vector.shape_cast %51 : vector<8x8x8xf32> to vector<64x8xf32>
    %53 = arith.truncf %52 : vector<64x8xf32> to vector<64x8xbf16>
    %c64 = arith.constant 64 : index
    %c0_20 = arith.constant 0 : index
    %54 = vector.load %arg2[%c64, %c0_20] : memref<72x128xbf16, #tpu.memory_space<vmem>>, vector<8x128xbf16>
    %cst_21 = arith.constant dense<0.000000e+00> : vector<64x128xf32>
    %55 = tpu.matmul %53, %54, %cst_21 {dimension_numbers = #tpu.dot_dimension_numbers<[1], [0], [0], [1], [0, 0, 1, 1], [], []>} : vector<64x8xbf16>, vector<8x128xbf16>, vector<64x128xf32> -> vector<64x128xf32>
    %56 = arith.addf %50, %55 : vector<64x128xf32>
    %c0_22 = arith.constant 0 : index
    %c0_23 = arith.constant 0 : index
    %57 = vector.load %arg3[%c0_22, %c0_23] : memref<1x128xf32, #tpu.memory_space<vmem>>, vector<1x128xf32>
    %58 = vector.shape_cast %57 : vector<1x128xf32> to vector<128xf32>
    %59 = vector.shape_cast %58 : vector<128xf32> to vector<1x128xf32>
    %60 = vector.broadcast %59 : vector<1x128xf32> to vector<64x128xf32>
    %61 = arith.addf %56, %60 : vector<64x128xf32>
    %cst_24 = arith.constant 5.000000e-01 : f32
    %62 = vector.broadcast %cst_24 : f32 to vector<64x128xf32>
    %63 = arith.mulf %62, %61 : vector<64x128xf32>
    %cst_25 = arith.constant 0.707106769 : f32
    %64 = vector.broadcast %cst_25 : f32 to vector<64x128xf32>
    %65 = arith.mulf %61, %64 : vector<64x128xf32>
    %cst_26 = arith.constant 0.000000e+00 : f32
    %66 = vector.broadcast %cst_26 : f32 to vector<64x128xf32>
    %67 = arith.cmpf oge, %65, %66 : vector<64x128xf32>
    %cst_27 = arith.constant 1.000000e+00 : f32
    %cst_28 = arith.constant -1.000000e+00 : f32
    %68 = vector.broadcast %cst_27 : f32 to vector<64x128xf32>
    %69 = vector.broadcast %cst_28 : f32 to vector<64x128xf32>
    %70 = arith.select %67, %68, %69 : vector<64x128xi1>, vector<64x128xf32>
    %71 = math.absf %65 : vector<64x128xf32>
    %cst_29 = arith.constant 0.327591091 : f32
    %72 = vector.broadcast %cst_29 : f32 to vector<64x128xf32>
    %73 = arith.mulf %72, %71 : vector<64x128xf32>
    %cst_30 = arith.constant 1.000000e+00 : f32
    %74 = vector.broadcast %cst_30 : f32 to vector<64x128xf32>
    %75 = arith.addf %74, %73 : vector<64x128xf32>
    %76 = tpu.reciprocal %75 {approx = true} : vector<64x128xf32> -> vector<64x128xf32>
    %cst_31 = arith.constant 1.06140542 : f32
    %77 = vector.broadcast %cst_31 : f32 to vector<64x128xf32>
    %78 = arith.mulf %77, %76 : vector<64x128xf32>
    %cst_32 = arith.constant -1.45315206 : f32
    %79 = vector.broadcast %cst_32 : f32 to vector<64x128xf32>
    %80 = arith.addf %78, %79 : vector<64x128xf32>
    %81 = arith.mulf %80, %76 : vector<64x128xf32>
    %cst_33 = arith.constant 1.42141378 : f32
    %82 = vector.broadcast %cst_33 : f32 to vector<64x128xf32>
    %83 = arith.addf %81, %82 : vector<64x128xf32>
    %84 = arith.mulf %83, %76 : vector<64x128xf32>
    %cst_34 = arith.constant -0.284496725 : f32
    %85 = vector.broadcast %cst_34 : f32 to vector<64x128xf32>
    %86 = arith.addf %84, %85 : vector<64x128xf32>
    %87 = arith.mulf %86, %76 : vector<64x128xf32>
    %cst_35 = arith.constant 0.254829586 : f32
    %88 = vector.broadcast %cst_35 : f32 to vector<64x128xf32>
    %89 = arith.addf %87, %88 : vector<64x128xf32>
    %90 = arith.mulf %89, %76 : vector<64x128xf32>
    %cst_36 = arith.constant 0.000000e+00 : f32
    %91 = vector.broadcast %cst_36 : f32 to vector<64x128xf32>
    %92 = arith.subf %91, %71 : vector<64x128xf32>
    %93 = arith.mulf %92, %71 : vector<64x128xf32>
    %94 = math.exp %93 : vector<64x128xf32>
    %95 = arith.mulf %90, %94 : vector<64x128xf32>
    %cst_37 = arith.constant 1.000000e+00 : f32
    %96 = vector.broadcast %cst_37 : f32 to vector<64x128xf32>
    %97 = arith.subf %96, %95 : vector<64x128xf32>
    %98 = arith.mulf %70, %97 : vector<64x128xf32>
    %cst_38 = arith.constant 1.000000e+00 : f32
    %99 = vector.broadcast %cst_38 : f32 to vector<64x128xf32>
    %100 = arith.addf %99, %98 : vector<64x128xf32>
    %101 = arith.mulf %63, %100 : vector<64x128xf32>
    %c0_39 = arith.constant 0 : index
    %c0_40 = arith.constant 0 : index
    %c0_41 = arith.constant 0 : index
    %102 = vector.load %arg4[%c0_39, %c0_40, %c0_41] : memref<1x64x128xf32, #tpu.memory_space<vmem>>, vector<1x64x128xf32>
    %103 = vector.shape_cast %102 : vector<1x64x128xf32> to vector<64x128xf32>
    %104 = vector.shape_cast %101 : vector<64x128xf32> to vector<1x64x128xf32>
    tpu.vector_store %arg4[%c0_39, %c0_40, %c0_41], %104 {strides = array<i32>} : memref<1x64x128xf32, #tpu.memory_space<vmem>>, vector<1x64x128xf32>,
    return
  }
  func.func @transform_0(%arg0: i32) -> (i32, i32, i32, i32) {
    %c0_i32 = arith.constant 0 : i32
    %c0_i32_0 = arith.constant 0 : i32
    %c0_i32_1 = arith.constant 0 : i32
    %c0_i32_2 = arith.constant 0 : i32
    return %arg0, %c0_i32, %c0_i32_0, %c0_i32_1 : i32, i32, i32, i32
  }
  func.func @transform_1(%arg0: i32) -> (i32, i32) {
    %c0_i32 = arith.constant 0 : i32
    %c0_i32_0 = arith.constant 0 : i32
    %c0_i32_1 = arith.constant 0 : i32
    return %c0_i32, %c0_i32_0 : i32, i32
  }
  func.func @transform_2(%arg0: i32) -> (i32, i32) {
    %c0_i32 = arith.constant 0 : i32
    %c0_i32_0 = arith.constant 0 : i32
    %c0_i32_1 = arith.constant 0 : i32
    return %c0_i32, %c0_i32_0 : i32, i32
  }
  func.func @transform_3(%arg0: i32) -> (i32, i32, i32) {
    %c0_i32 = arith.constant 0 : i32
    %c0_i32_0 = arith.constant 0 : i32
    %c0_i32_1 = arith.constant 0 : i32
    return %arg0, %c0_i32, %c0_i32_0 : i32, i32, i32
  }
}

</mosaic_0001>

<bundles_post_ra>
// kernel: tpu_custom_call.1
= control target key start
LH: loop header
LB: loop body
LE: loop exit
PB: predicated region body
PF: predicated region fallthrough
CT: control target
= control target key end

     0   :  { %8 = vsyncpa [#allocation3], 0  ;;  %s2319_s0 = inlined_call_operand.vmem [shape: f32[2,10,10,8], index: 0, kind: input, shape index: {}]   ;;  %s2320_s1 = inlined_call_operand.vmem [shape: bf16[72,128], index: 1, kind: input, shape index: {}]   ;;  %s2321_s2 = inlined_call_operand.vmem [shape: f32[1,128], index: 2, kind: input, shape index: {}]   ;;  %s2322_s3 = inlined_call_operand.hbm [shape: f32[2,64,128], index: 3, kind: output, shape index: {}]  }
   0x1   :  { %10 = vsyncpa [#allocation3 + $0x1], 0  ;;  %s1809_s12 = smov 0   ;;  %s1811_s13 = smov 0  }
   0x2   :  { %s1813_s14 = smov 0   ;;  %s1815_s15 = smov 0  }
   0x3 LB: > { %s1830_s16 = sadd.s32 4294967295, %s1783_s15   ;;  %s1386_s17 = sadd.s32 4294967294, %s1783_s15   ;;  %s1783_s15 = sphi %s1815_s15, %s2328_s15   ;;  %s1779_s14 = sphi %s1813_s14, %s2327_s14   ;;  %s1775_s13 = sphi %s1811_s13, %s2326_s13   ;;  %s1771_s12 = sphi %s1809_s12, %s2325_s12  }
   0x4   : > { %s1834_s18 = sadd.s32 1, %s1783_s15   ;;  %s91_s19 = sadd.s32 1, %s1779_s14 }
   0x5   : > { %s88_s20 = ssub.s32 %s1783_s15, %s1834_s18  ;;  %p101_p0 = scmp.ne.s32.totalorder %s1779_s14, %s1775_s13 }
   0x6   : > { %p89_p1 = scmp.eq.s32.totalorder %s88_s20, 0  ;;  %p102_p2 = scmp.eq.s32.totalorder %s1830_s16, 1 }
   0x7   : > { %p107_p3 = scmp.ne.s32.totalorder %s1775_s13, %s1771_s12  ;;  %p108_p4 = scmp.eq.s32.totalorder %s1386_s17, 1 }
   0x8   : > { %s1845_s21 = scalar_select %p89_p1, %s1779_s14, %s91_s19  }
   0x9   : > { %p1847_p5 = por %p102_p2, %p101_p0  ;;  %p1851_p6 = por %p108_p4, %p107_p3 }
   0xa   : > { %p1389_p7 = scmp.ge.s32.totalorder %s1783_s15, 1  ;;  %p140_p8 = scmp.lt.s32.totalorder %s1783_s15, 3 }
   0xc   : > { %p141_p9 = pnand %p1389_p7, %p140_p8 }
   0xd   : > { %v248_v0 = vld [vmem:[%s2320_s1 + $0x4] sm:$0xf] (!%p141_p9)  ;;  %vm262_vm0 = vcmask (!%p141_p9), 1043456   ;;  %v1863_v1 = vld [vmem:[%s2320_s1 + $0x10] sm:$0xf] (!%p141_p9)  ;;  %p164_p10 = scmp.lt.s32.totalorder (!%p141_p9), %s1830_s16, 1 }
   0xe   : > { %144 = sbr.rel (%p141_p9) target bundleno = 398 (0x18e), region = 32  ;;  %1636 = vmatprep.subr.msk.bf16.mxu1 (!%p141_p9), %vm262_vm0, %v248_v0  ;;  %1640 = vmatprep.subr.msk.bf16.mxu0 (!%p141_p9), %vm262_vm0, %v1863_v1  ;;  %v264_v2 = vsel (!%p141_p9), %vm262_vm0, %v248_v0, 0  ;;  %v1872_v3 = vsel (!%p141_p9), %vm262_vm0, %v1863_v1, 0  ;;  %v194_v4 = vld [vmem:[%s2320_s1] sm:$0xf] (!%p141_p9)  ;;  %vm211_vm1 = vcmask (!%p141_p9), 1046528  }
   0xf   : > { %1481 = vmatpush3.bf16.msra.mxu1 (!%p141_p9), %v264_v2  ;;  %1521 = vmatpush3.bf16.msra.mxu0 (!%p141_p9), %v1872_v3  ;;  %v737_v5 = vld [vmem:[%s2320_s1 + $0x14] sm:$0xf] (!%p141_p9)  ;;  %vm249_vm2 = vcmask (!%p141_p9), 64512   ;;  %v344_v13 = vsel (!%p141_p9), %vm262_vm0, %v194_v4, 0  ;;  %vm411_vm3 = vcmask (!%p141_p9), 1045504   ;;  %s161_s4 = sand.u32 (!%p141_p9), 1, %s1775_s13  }
  0x10   : > { %1637 = vmatprep.subr.msk.bf16.mxu1 (!%p141_p9), %vm262_vm0, %v194_v4  ;;  %1642 = vmatprep.subr.msk.bf16.mxu0 (!%p141_p9), %vm262_vm0, %v737_v5  ;;  %v751_v17 = vsel (!%p141_p9), %vm262_vm0, %v737_v5, 0  ;;  %v827_v54 = vld [vmem:[%s2320_s1 + $0x18] sm:$0xf] (!%p141_p9)  ;;  %v448_v59 = vld [vmem:[%s2320_s1 + $0x8] sm:$0xf] (!%p141_p9)  ;;  %s1390_s5 = sshll.u32 (!%p141_p9), %s161_s4, 6 }
  0x11   : > { %s1434_s7 = sshll.u32 (!%p141_p9), %s1830_s16, 10  ;;  %s2278_s17 = scalar_lea.sflag (!%p141_p9), [#allocation3], %s161_s4 }
  0x12   : > { %s2271_s11 = scalar_lea.hbm (!%p141_p9), %s2322_s3, %s1434_s7  ;;  %s1786_s19 = smov (!%p141_p9), [#allocation2]  }
  0x13   : > { %s1725_s20 = sshll.u32 (!%p141_p9), %s1786_s19, 4  ;;  %s1726_s20 = int_to_ptr.vmem [resolvable:$false] %s1725_s20 }
  0x14   : > { %s1727_s24 = scalar_lea.vmem (!%p141_p9), %s1726_s20, 2048 }
  0x15   : > { %s165_s30 = scalar_select %p164_p10, %s1830_s16, 1 }
  0x17   : > { %s1646_s6 = smul.u32 160, %s165_s30 }
  0x19   : > { %s1887_s9 = scalar_lea.vmem %s2319_s0, %s1646_s6  ;;  %s2233_s6 = scalar_lea.vmem [#allocation2], %s1390_s5 }
  0x1a   : > { %v1890_v6 = vld [vmem:[%s1887_s9] sm:$0xff]  ;;  %v1893_v7 = vld [vmem:[%s1887_s9 + $0x8] sm:$0x3]  ;;  %v1896_v8 = vld [vmem:[%s1887_s9 + $0x10] sm:$0xff]  ;;  %s1324_s8 = sshll.u32 %s2233_s6, 4  ;;  %s2273_s8 = int_to_ptr.vmem [resolvable:$true] %s1324_s8 }
  0x1b   : > { %v1899_v9 = vld [vmem:[%s1887_s9 + $0x18] sm:$0x3]  ;;  %v212_v10 = vrot.slane %v1890_v6, 1  ;;  %v213_v11 = vrot.slane %v1893_v7, 1  ;;  %v215_v12 = vrot.slane %v1896_v8, 1  ;;  %v1907_v15 = vld [vmem:[%s1887_s9 + $0x20] sm:$0xff]  ;;  %p1728_p0 = scmp.lt.s32.totalorder %s2273_s8, %s1726_s20 }
  0x1c   : > { %v216_v14 = vrot.slane %v1899_v9, 1  ;;  %v175_v16 = vld [vmem:[%s1887_s9 + $0x28] sm:$0x3]  ;;  %v1913_v19 = vld [vmem:[%s1887_s9 + $0x30] sm:$0xff]  ;;  %v1916_v20 = vld [vmem:[%s1887_s9 + $0x38] sm:$0x3] }
  0x1d   : > { %v214_v18 = vsel %vm211_vm1, %v212_v10, %v213_v11  ;;  %v1919_v21 = vld [vmem:[%s1887_s9 + $0x40] sm:$0xff]  ;;  %v218_v22 = vrot.slane %v1907_v15, 1  ;;  %v219_v23 = vrot.slane %v175_v16, 1  ;;  %v179_v25 = vld [vmem:[%s1887_s9 + $0x48] sm:$0x3]  ;;  %v221_v26 = vrot.slane %v1913_v19, 1 }
  0x1e   : > { %v217_v24 = vsel %vm211_vm1, %v215_v12, %v216_v14  ;;  %v222_v27 = vrot.slane %v1916_v20, 1  ;;  %v1927_v28 = vld [vmem:[%s1887_s9 + $0x50] sm:$0xff]  ;;  %v1930_v29 = vld [vmem:[%s1887_s9 + $0x60] sm:$0xff]  ;;  %v224_v32 = vrot.slane %v1919_v21, 1  ;;  %v225_v33 = vrot.slane %v179_v25, 1  ;;  %s1721_s16 = scalar_lea.vmem %s2273_s8, 1024 }
  0x1f   : > { %v244_v30 = vpack.c.bf16 %v217_v24, %v214_v18  ;;  %v220_v31 = vsel %vm211_vm1, %v218_v22, %v219_v23  ;;  %v181_v34 = vld [vmem:[%s1887_s9 + $0x58] sm:$0x3]  ;;  %v183_v35 = vld [vmem:[%s1887_s9 + $0x68] sm:$0x3]  ;;  %v416_v36 = vrot.slane %v1899_v9, 2  ;;  %v419_v38 = vrot.slane %v175_v16, 2  ;;  %p1722_p11 = scmp.ne.s32.totalorder %s2273_s8, %s1721_s16  ;;  %p1729_p1 = scmp.lt.s32.totalorder %s1727_s24, %s1721_s16 }
  0x20   : > { %v223_v37 = vsel %vm211_vm1, %v221_v26, %v222_v27  ;;  %v422_v39 = vrot.slane %v1916_v20, 2  ;;  %v1940_v40 = vld [vmem:[%s1887_s9 + $0x70] sm:$0xff]  ;;  %v1943_v41 = vld [vmem:[%s1887_s9 + $0x78] sm:$0x3]  ;;  %v226_v42 = vsel %vm211_vm1, %v224_v32, %v225_v33  ;;  %v425_v44 = vrot.slane %v179_v25, 2  ;;  %v1999_v18 = vld [vmem:[%s1887_s9 + $0x80] sm:$0xff] }
  0x21   : > { %1482 = vmatprep.mubr.msk.bf16.mxu1 %vm249_vm2, %v244_v30  ;;  %v1947_v43 = vpack.c.bf16 %v223_v37, %v220_v31  ;;  %v636_v45 = vpack.c.bf16 %v220_v31, %v217_v24  ;;  %v637_v46 = vpack.c.bf16 %v226_v42, %v223_v37  ;;  %v227_v47 = vrot.slane %v1927_v28, 1  ;;  %v2002_v20 = vld [vmem:[%s1887_s9 + $0x88] sm:$0x3]  ;;  %v914_v32 = vld [vmem:[%s2320_s1 + $0x1c] sm:$0xf]  ;;  %p1723_p12 = pnand %p1722_p11, %p1847_p5  ;;  %p1730_p2 = por %p1729_p1, %p1728_p0 }
  0x22   : > { %v228_v48 = vrot.slane %v181_v34, 1  ;;  %v230_v49 = vrot.slane %v1930_v29, 1  ;;  %v231_v50 = vrot.slane %v183_v35, 1  ;;  %v233_v51 = vrot.slane %v1940_v40, 1 }
  0x23   : > { %1522 = vmatprep.mubr.msk.bf16.mxu0 %vm249_vm2, %v636_v45  ;;  %1483 = vmatmul.mubr.msk.bf16.vlgmr.msra.gmra.mrb[0].mxu1 %vm249_vm2, %v1947_v43  ;;  %v234_v52 = vrot.slane %v1943_v41, 1  ;;  %v415_v53 = vrot.slane %v1896_v8, 2  ;;  %v418_v56 = vrot.slane %v1907_v15, 2  ;;  %v421_v57 = vrot.slane %v1913_v19, 2  ;;  %p1724_p13 = pneg %p1723_p12 }
  0x24   : > { %1491 = vmatpush3.bf16.msra.mxu1 %v344_v13  ;;  %1523 = vmatmul.mubr.msk.bf16.vlgmr.msra.gmra.mrb[0].mxu0 %vm249_vm2, %v637_v46  ;;  %v1962_v55 = vsel %vm211_vm1, %v227_v47, %v228_v48  ;;  %v424_v58 = vrot.slane %v1919_v21, 2  ;;  %v1974_v61 = vsel %vm211_vm1, %v230_v49, %v231_v50  ;;  %v427_v5 = vrot.slane %v1927_v28, 2  ;;  %v999_v46 = vld [vmem:[%s2320_s1 + $0x20] sm:$0xf]  ;;  %v188_v49 = vld [vmem:[%s1887_s9 + $0x90] sm:$0xff] }
  0x25   : > { %1531 = vmatpush3.bf16.msra.mxu0 %v751_v17  ;;  %v1971_v60 = vpack.c.bf16 %v1962_v55, %v226_v42  ;;  %v1977_v62 = vsel %vm211_vm1, %v233_v51, %v234_v52  ;;  %v417_v63 = vsel %vm411_vm3, %v415_v53, %v416_v36  ;;  %v420_v0 = vsel %vm411_vm3, %v418_v56, %v419_v38  ;;  %v189_v53 = vld [vmem:[%s1887_s9 + $0x98] sm:$0x3]  ;;  %p1731_p3 = pnand %p1730_p2, %p1724_p13 }
  0x26   : > { %1643 = vmatprep.subr.msk.bf16.mxu0 %vm262_vm0, %v827_v54  ;;  %v1986_v2 = vpack.c.bf16 %v1977_v62, %v1974_v61  ;;  %v733_v4 = vpack.c.bf16 %v420_v0, %v417_v63  ;;  %1638 = vmatprep.subr.msk.bf16.mxu1 %vm262_vm0, %v448_v59  ;;  %v190_v9 = vpack.c.bf16 %v1896_v8, %v1890_v6  ;;  %v428_v10 = vrot.slane %v181_v34, 2 }
  0x27   : > { %1486 = vmatprep.mubr.msk.bf16.mxu1 %vm249_vm2, %v1971_v60  ;;  %v430_v11 = vrot.slane %v1930_v29, 2  ;;  %v431_v12 = vrot.slane %v183_v35, 2  ;;  %v423_v13 = vsel %vm411_vm3, %v421_v57, %v422_v39  ;;  %v426_v14 = vsel %vm411_vm3, %v424_v58, %v425_v44  ;;  %v541_v39 = vld [vmem:[%s2320_s1 + $0xc] sm:$0xf] }
  0x28   : > { %1532 = vmatprep.mubr.msk.bf16.mxu0 %vm249_vm2, %v733_v4  ;;  %v429_v16 = vsel %vm411_vm3, %v427_v5, %v428_v10  ;;  %v734_v22 = vpack.c.bf16 %v426_v14, %v423_v13  ;;  %v433_v23 = vrot.slane %v1940_v40, 2  ;;  %v434_v25 = vrot.slane %v1943_v41, 2  ;;  %v2099_v5 = vld [vmem:[%s2321_s2] ss:$0 sm:$0xff] }
  0x29   : > { %v432_v17 = vsel %vm411_vm3, %v430_v11, %v431_v12  ;;  %v729_v26 = vrot.slane %v1999_v18, 2  ;;  %v730_v27 = vrot.slane %v2002_v20, 2  ;;  %v832_v30 = vsel %vm262_vm0, %v827_v54, 0 }
  0x2a   : > { %v735_v24 = vpack.c.bf16 %v432_v17, %v429_v16  ;;  %v191_v31 = vpack.c.bf16 %v1913_v19, %v1907_v15  ;;  %v462_v33 = vsel %vm262_vm0, %v448_v59, 0  ;;  %v192_v34 = vpack.c.bf16 %v1927_v28, %v1919_v21 }
  0x2b   : > { %1487 = vmatmul.mubr.msk.bf16.gmra.mrb[4].mxu1 %vm249_vm2, %v1986_v2  ;;  %v412_v35 = vrot.slane %v1890_v6, 2  ;;  %v413_v36 = vrot.slane %v1893_v7, 2  ;;  %v435_v37 = vsel %vm411_vm3, %v433_v23, %v434_v25  ;;  %v2026_v38 = vsel %vm411_vm3, %v729_v26, %v730_v27 }
  0x2c   : > { %1492 = vmatprep.mubr.msk.bf16.mxu1 %vm249_vm2, %v190_v9  ;;  %v736_v6 = vpack.c.bf16 %v2026_v38, %v435_v37  ;;  %v193_v41 = vpack.c.bf16 %v1940_v40, %v1930_v29  ;;  %v919_v44 = vsel %vm262_vm0, %v914_v32, 0  ;;  %v445_v45 = vpack.c.bf16 %v423_v13, %v420_v0 }
  0x2d   : > { %v414_v7 = vsel %vm411_vm3, %v412_v35, %v413_v36  ;;  %v446_v47 = vpack.c.bf16 %v429_v16, %v426_v14  ;;  %v555_v48 = vsel %vm262_vm0, %v541_v39, 0  ;;  %v826_v50 = vpack.c.bf16 %v188_v49, %v1999_v18 }
  0x2e   : > { %v444_v42 = vpack.c.bf16 %v417_v63, %v414_v7  ;;  %v447_v51 = vpack.c.bf16 %v435_v37, %v432_v17  ;;  %v537_v52 = vpack.c.bf16 %v1907_v15, %v1896_v8  ;;  %v909_v54 = vrot.slane %v188_v49, 1 }
  0x2f   : > { %v632_v56 = vrot.slane %v1999_v18, 1  ;;  %v633_v57 = vrot.slane %v2002_v20, 1  ;;  %v1004_v58 = vsel %vm262_vm0, %v999_v46, 0  ;;  %v538_v59 = vpack.c.bf16 %v1919_v21, %v1913_v19 }
  0x30   : > { %1533 = vmatmul.mubr.msk.bf16.vlgmr.msra.gmra.mrb[0].mxu0 %vm249_vm2, %v734_v22  ;;  %v539_v8 = vpack.c.bf16 %v1930_v29, %v1927_v28  ;;  %v540_v19 = vpack.c.bf16 %v1999_v18, %v1940_v40  ;;  %v638_v21 = vpack.c.bf16 %v1974_v61, %v1962_v55  ;;  %v994_v28 = vrot.slane %v188_v49, 2 }
  0x31   : > { %1541 = vmatpush3.bf16.msra.mxu0 %v832_v30  ;;  %1536 = vmatprep.mubr.msk.bf16.mxu0 %vm249_vm2, %v735_v24  ;;  %v634_v15 = vsel %vm211_vm1, %v632_v56, %v633_v57  ;;  %v995_v29 = vrot.slane %v189_v53, 2 }
  0x32   : > { %1644 = vmatprep.subr.msk.bf16.mxu0 %vm262_vm0, %v914_v32  ;;  %v639_v40 = vpack.c.bf16 %v634_v15, %v1977_v62 }
  0x33   : > { %1493 = vmatmul.mubr.msk.bf16.vlgmr.msra.gmra.mrb[0].mxu1 %vm249_vm2, %v191_v31 }
  0x34   : > { %1501 = vmatpush3.bf16.msra.mxu1 %v462_v33  ;;  %1496 = vmatprep.mubr.msk.bf16.mxu1 %vm249_vm2, %v192_v34 }
  0x35   : > { %1639 = vmatprep.subr.msk.bf16.mxu1 %vm262_vm0, %v541_v39 }
  0x38   : > { %1537 = vmatmul.mubr.msk.bf16.gmra.mrb[4].mxu0 %vm249_vm2, %v736_v6 }
  0x39   : > { %1542 = vmatprep.mubr.msk.bf16.mxu0 %vm249_vm2, %v191_v31 }
  0x3b   : > { %1497 = vmatmul.mubr.msk.bf16.gmra.mrb[4].mxu1 %vm249_vm2, %v193_v41 }
  0x3c   : > { %1502 = vmatprep.mubr.msk.bf16.mxu1 %vm249_vm2, %v444_v42 }
  0x40   : > { %1543 = vmatmul.mubr.msk.bf16.vlgmr.msra.gmra.mrb[0].mxu0 %vm249_vm2, %v192_v34 }
  0x41   : > { %1551 = vmatpush3.bf16.msra.mxu0 %v919_v44  ;;  %1546 = vmatprep.mubr.msk.bf16.mxu0 %vm249_vm2, %v193_v41 }
  0x42   : > { %1645 = vmatprep.subr.msk.bf16.mxu0 %vm262_vm0, %v999_v46 }
  0x43   : > { %1503 = vmatmul.mubr.msk.bf16.vlgmr.msra.gmra.mrb[0].mxu1 %vm249_vm2, %v445_v45 }
  0x44   : > { %1511 = vmatpush3.bf16.msra.mxu1 %v555_v48  ;;  %1506 = vmatprep.mubr.msk.bf16.mxu1 %vm249_vm2, %v446_v47 }
  0x45   : > { %1641 = vmatprep.subr.msk.bf16.mxu1 %vm262_vm0, %v1863_v1  ;;  %v910_v1 = vrot.slane %v189_v53, 1 }
  0x48   : > { %1547 = vmatmul.mubr.msk.bf16.gmra.mrb[4].mxu0 %vm249_vm2, %v826_v50 }
  0x49   : > { %1552 = vmatprep.mubr.msk.bf16.mxu0 %vm249_vm2, %v1947_v43  ;;  %v911_v43 = vsel %vm211_vm1, %v909_v54, %v910_v1 }
  0x4a   : > { %v913_v63 = vpack.c.bf16 %v911_v43, %v634_v15  ;;  %v1785_v43 = vmov -1.0  }
  0x4b   : > { %1507 = vmatmul.mubr.msk.bf16.gmra.mrb[4].mxu1 %vm249_vm2, %v447_v51 }
  0x4c   : > { %1512 = vmatprep.mubr.msk.bf16.mxu1 %vm249_vm2, %v537_v52 }
  0x50   : > { %1553 = vmatmul.mubr.msk.bf16.vlgmr.msra.gmra.mrb[0].mxu0 %vm249_vm2, %v1971_v60 }
  0x51   : > { %1561 = vmatpush3.bf16.msra.mxu0 %v1004_v58  ;;  %1556 = vmatprep.mubr.msk.bf16.mxu0 %vm249_vm2, %v1986_v2 }
  0x53   : > { %1513 = vmatmul.mubr.msk.bf16.vlgmr.msra.gmra.mrb[0].mxu1 %vm249_vm2, %v538_v59 }
  0x54   : > { %1571 = vmatpush3.bf16.msra.mxu1 %v1872_v3  ;;  %1516 = vmatprep.mubr.msk.bf16.mxu1 %vm249_vm2, %v539_v8  ;;  %v996_v3 = vsel %vm411_vm3, %v994_v28, %v995_v29 }
  0x55   : > { %v998_v60 = vpack.c.bf16 %v996_v3, %v2026_v38 }
  0x58   : > { %1557 = vmatmul.mubr.msk.bf16.gmra.mrb[4].mxu0 %vm249_vm2, %v913_v63 }
  0x59   : > { %1562 = vmatprep.mubr.msk.bf16.mxu0 %vm249_vm2, %v445_v45 }
  0x5b   : > { %1517 = vmatmul.mubr.msk.bf16.gmra.mrb[4].mxu1 %vm249_vm2, %v540_v19 }
  0x5c   : > { %1526 = vmatprep.mubr.msk.bf16.mxu1 %vm249_vm2, %v638_v21 }
  0x60   : > { %1563 = vmatmul.mubr.msk.bf16.vlgmr.msra.gmra.mrb[0].mxu0 %vm249_vm2, %v446_v47 }
  0x61   : > { %1566 = vmatprep.mubr.msk.bf16.mxu0 %vm249_vm2, %v447_v51 }
  0x67   : > { %1527 = vmatmul.mubr.msk.bf16.vlgmr.msra.gmra.mrb[4].mxu1 %vm249_vm2, %v639_v40 }
  0x68   : > { %1567 = vmatmul.mubr.msk.bf16.gmra.mrb[4].mxu0 %vm249_vm2, %v998_v60 }
 0x126   : > { %v1514_v55 = vpop.f32.mrb[0].mxu1 }
 0x127   : > { %v591_v61 = vpop.f32.mrb[1].mxu1 }
 0x128   : > { %v1515_v0 = vpop.f32.mrb[2].mxu1 }
 0x129   : > { %v594_v2 = vpop.f32.mrb[3].mxu1 }
 0x133   : > { %v1564_v4 = vpop.f32.mrb[0].mxu0 }
 0x134   : > { %v1572_v9 = vadd.f32 %v1564_v4, %v1514_v55  ;;  %v1040_v10 = vpop.f32.mrb[1].mxu0 }
 0x135   : > { %v1573_v11 = vadd.f32 %v1040_v10, %v591_v61  ;;  %v1565_v62 = vpop.f32.mrb[2].mxu0 }
 0x136   : > { %v1088_v12 = vadd.f32 %v1572_v9, %v2099_v5  ;;  %v1574_v13 = vadd.f32 %v1565_v62, %v1515_v0  ;;  %v1043_v14 = vpop.f32.mrb[3].mxu0 }
 0x137   : > { %v1086_v16 = vadd.f32 %v1573_v11, %v2099_v5  ;;  %v1575_v17 = vadd.f32 %v1043_v14, %v594_v2 }
 0x138   : > { %v1104_v18 = vmul.f32 0.70710677, %v1088_v12  ;;  %v2104_v20 = vadd.f32 %v1574_v13, %v2099_v5  ;;  %v2133_v15 = vmul.f32 0.5, %v1088_v12 }
 0x139   : > { %v1102_v22 = vmul.f32 0.70710677, %v1086_v16  ;;  %v2108_v25 = vadd.f32 %v1575_v17, %v2099_v5  ;;  %v2139_v19 = vmul.f32 0.5, %v1086_v16 }
 0x13a   : > { %v1128_v23 = vand.u32 2147483647, %v1104_v18  ;;  %v1105_v24 = vmul.f32 0.70710677, %v2104_v20  ;;  %v1528_v27 = vpop.f32.mrb[4].mxu1  ;;  %vm1112_vm4 = vcmp.ge.f32.partialorder %v1104_v18, 0.0 }
 0x13b   : > { %v1126_v26 = vand.u32 2147483647, %v1102_v22  ;;  %v1568_v31 = vpop.f32.mrb[4].mxu0  ;;  %v2113_v35 = vmul.f32 0.70710677, %v2108_v25  ;;  %v706_v37 = vpop.f32.mrb[5].mxu1 }
 0x13c   : > { %v1136_v30 = vmul.f32 0.3275911, %v1128_v23  ;;  %v2110_v33 = vand.u32 2147483647, %v1105_v24  ;;  %v1576_v36 = vadd.f32 %v1568_v31, %v1528_v27  ;;  %v1056_v38 = vpop.f32.mrb[5].mxu0  ;;  %v1529_v7 = vpop.f32.mrb[6].mxu1 }
 0x13d   : > { %v1134_v32 = vmul.f32 0.3275911, %v1126_v26  ;;  %v1569_v41 = vpop.f32.mrb[6].mxu0  ;;  %v1127_v42 = vand.u32 2147483647, %v2113_v35  ;;  %v709_v44 = vpop.f32.mrb[7].mxu1  ;;  %v1577_v50 = vadd.f32 %v1056_v38, %v706_v37 }
 0x13e   : > { %v1144_v34 = vadd.f32 1.0, %v1136_v30  ;;  %v1137_v6 = vmul.f32 0.3275911, %v2110_v33  ;;  %v1059_v46 = vpop.f32.mrb[7].mxu0  ;;  %v1232_v47 = vsub.f32 0.0, %v1128_v23  ;;  %v2118_v49 = vadd.f32 %v1576_v36, %v2099_v5 }
 0x13f   : > { %v1142_v39 = vadd.f32 1.0, %v1134_v32  ;;  %v1135_v48 = vmul.f32 0.3275911, %v1127_v42  ;;  %v1578_v52 = vadd.f32 %v1569_v41, %v1529_v7  ;;  %vm1110_vm5 = vcmp.ge.f32.partialorder %v1102_v22, 0.0 }
 0x140   : > { %1689 = vrcp.f32 %v1144_v34  ;;  %v1145_v45 = vadd.f32 1.0, %v1137_v6  ;;  %v1230_v53 = vsub.f32 0.0, %v1126_v26  ;;  %v2121_v54 = vmul.f32 0.70710677, %v2118_v49 }
 0x141   : > { %1691 = vrcp.f32 %v1142_v39  ;;  %v1143_v51 = vadd.f32 1.0, %v1135_v48  ;;  %v2124_v56 = vadd.f32 %v1577_v50, %v2099_v5  ;;  %v1240_v57 = vmul.f32 %v1232_v47, %v1128_v23 }
 0x142   : > { %1693 = vrcp.f32 %v1145_v45  ;;  %v2127_v1 = vadd.f32 %v1578_v52, %v2099_v5  ;;  %v1579_v58 = vadd.f32 %v1059_v46, %v709_v44  ;;  %vm1113_vm6 = vcmp.ge.f32.partialorder %v1105_v24, 0.0 }
 0x143   : > { %1695 = vrcp.f32 %v1143_v51  ;;  %v1132_v59 = vand.u32 2147483647, %v2121_v54  ;;  %v2131_v8 = vmul.f32 0.70710677, %v2124_v56  ;;  %v2137_v63 = vsel %vm1112_vm4, 1.0, %v1785_v43 }
 0x144   : > { %v2142_v21 = vmul.f32 0.70710677, %v2127_v1  ;;  %v2146_v28 = vsel %vm1110_vm5, 1.0, %v1785_v43  ;;  %v1238_v29 = vmul.f32 %v1230_v53, %v1126_v26  ;;  %v1250_v55 = vmul.f32 1.442695, %v1240_v57 }
 0x145   : > { %v1140_v3 = vmul.f32 0.3275911, %v1132_v59  ;;  %v1130_v40 = vand.u32 2147483647, %v2131_v8  ;;  %v2152_v61 = vsel %vm1113_vm6, 1.0, %v1785_v43  ;;  %v1233_v0 = vsub.f32 0.0, %v2110_v33 }
 0x146   : > { %v2156_v2 = vand.u32 2147483647, %v2142_v21  ;;  %v1231_v10 = vsub.f32 0.0, %v1127_v42  ;;  %vm1111_vm7 = vcmp.ge.f32.partialorder %v2113_v35, 0.0  ;;  %v1236_v13 = vsub.f32 0.0, %v1132_v59 }
 0x147   : > { %v1148_v11 = vadd.f32 1.0, %v1140_v3  ;;  %v1138_v62 = vmul.f32 0.3275911, %v1130_v40  ;;  %v1246_v17 = vmul.f32 1.442695, %v1238_v29  ;;  %v1241_v24 = vmul.f32 %v1233_v0, %v2110_v33 }
 0x148   : > { %v1141_v14 = vmul.f32 0.3275911, %v2156_v2  ;;  %v2168_v27 = vadd.f32 %v1579_v58, %v2099_v5  ;;  %v1239_v32 = vmul.f32 %v1231_v10, %v1127_v42  ;;  %v1244_v37 = vmul.f32 %v1236_v13, %v1132_v59 }
 0x149   : > { %1697 = vrcp.f32 %v1148_v11  ;;  %v1146_v18 = vadd.f32 1.0, %v1138_v62  ;;  %v1234_v38 = vsub.f32 0.0, %v1130_v40  ;;  %v1252_v7 = vmul.f32 1.442695, %v1241_v24 }
 0x14a   : > { %v2149_v60 = vpop.eup %1689  ;;  %v1149_v26 = vadd.f32 1.0, %v1141_v14  ;;  %1699 = vpow2.f32 %v1250_v55  ;;  %v2177_v41 = vmul.f32 0.70710677, %v2168_v27  ;;  %v1248_v46 = vmul.f32 1.442695, %v1239_v32 }
 0x14b   : > { %v2158_v4 = vpop.eup %1691  ;;  %v1160_v9 = vmul.f32 1.0614054, %v2149_v60  ;;  %1701 = vrcp.f32 %v1146_v18  ;;  %v2185_v48 = vsel %vm1111_vm7, 1.0, %v1785_v43  ;;  %v1242_v50 = vmul.f32 %v1234_v38, %v1130_v40 }
 0x14c   : > { %v1158_v12 = vmul.f32 1.0614054, %v2158_v4  ;;  %v2164_v22 = vpop.eup %1693  ;;  %1703 = vrcp.f32 %v1149_v26  ;;  %v2188_v51 = vand.u32 2147483647, %v2177_v41  ;;  %v1258_v58 = vmul.f32 1.442695, %v1244_v37 }
 0x14d   : > { %v1168_v16 = vadd.f32 -1.4531521, %v1160_v9  ;;  %v1161_v31 = vmul.f32 1.0614054, %v2164_v22  ;;  %v2172_v34 = vpop.eup %1695  ;;  %1705 = vpow2.f32 %v1246_v17  ;;  %v1237_v29 = vsub.f32 0.0, %v2156_v2 }
 0x14e   : > { %v1166_v23 = vadd.f32 -1.4531521, %v1158_v12  ;;  %v1159_v33 = vmul.f32 1.0614054, %v2172_v34  ;;  %1707 = vpow2.f32 %v1252_v7  ;;  %v1139_v3 = vmul.f32 0.3275911, %v2188_v51 }
 0x14f   : > { %v1176_v30 = vmul.f32 %v2149_v60, %v1168_v16  ;;  %v1169_v6 = vadd.f32 -1.4531521, %v1161_v31  ;;  %1709 = vpow2.f32 %v1248_v46  ;;  %v1254_v11 = vmul.f32 1.442695, %v1242_v50 }
 0x150   : > { %v1174_v36 = vmul.f32 %v2158_v4, %v1166_v23  ;;  %v1167_v45 = vadd.f32 -1.4531521, %v1159_v33  ;;  %v1147_v62 = vadd.f32 1.0, %v1139_v3  ;;  %1711 = vpow2.f32 %v1258_v58 }
 0x151   : > { %v1184_v39 = vadd.f32 1.4214138, %v1176_v30  ;;  %v1177_v44 = vmul.f32 %v2164_v22, %v1169_v6  ;;  %v1245_v24 = vmul.f32 %v1237_v29, %v2156_v2  ;;  %vm1116_vm8 = vcmp.ge.f32.partialorder %v2121_v54, 0.0 }
 0x152   : > { %v1182_v5 = vadd.f32 1.4214138, %v1174_v36  ;;  %v1175_v57 = vmul.f32 %v2172_v34, %v1167_v45  ;;  %1713 = vrcp.f32 %v1147_v62  ;;  %vm1114_vm9 = vcmp.ge.f32.partialorder %v2131_v8, 0.0 }
 0x153   : > { %v1192_v42 = vmul.f32 %v2149_v60, %v1184_v39  ;;  %v1185_v53 = vadd.f32 1.4214138, %v1177_v44  ;;  %v2193_v55 = vpop.eup %1697  ;;  %1715 = vpow2.f32 %v1254_v11  ;;  %v1260_v45 = vmul.f32 1.442695, %v1245_v24 }
 0x154   : > { %v1190_v47 = vmul.f32 %v2158_v4, %v1182_v5  ;;  %v1183_v0 = vadd.f32 1.4214138, %v1175_v57  ;;  %v1164_v10 = vmul.f32 1.0614054, %v2193_v55  ;;  %v1700_v12 = vpop.eup %1699  ;;  %vm1117_vm10 = vcmp.ge.f32.partialorder %v2142_v21, 0.0 }
 0x155   : > { %v1200_v52 = vadd.f32 -0.28449672, %v1192_v42  ;;  %v1193_v40 = vmul.f32 %v2164_v22, %v1185_v53  ;;  %v2200_v17 = vpop.eup %1701  ;;  %1717 = vpow2.f32 %v1260_v45  ;;  %v1125_v8 = vsel %vm1117_vm10, 1.0, %v1785_v43 }
 0x156   : > { %v1198_v59 = vadd.f32 -0.28449672, %v1190_v47  ;;  %v1191_v16 = vmul.f32 %v2172_v34, %v1183_v0  ;;  %v1172_v23 = vadd.f32 -1.4531521, %v1164_v10  ;;  %v2203_v26 = vpop.eup %1703  ;;  %v1162_v36 = vmul.f32 1.0614054, %v2200_v17 }
 0x157   : > { %v1208_v35 = vmul.f32 %v2149_v60, %v1200_v52  ;;  %v1201_v14 = vadd.f32 -0.28449672, %v1193_v40  ;;  %v1706_v37 = vpop.eup %1705  ;;  %v1165_v6 = vmul.f32 1.0614054, %v2203_v26  ;;  %vm1115_vm11 = vcmp.ge.f32.partialorder %v2177_v41, 0.0 }
 0x158   : > { %v1206_v9 = vmul.f32 %v2158_v4, %v1198_v59  ;;  %v1199_v32 = vadd.f32 -0.28449672, %v1191_v16  ;;  %v1180_v39 = vmul.f32 %v2193_v55, %v1172_v23  ;;  %v1708_v52 = vpop.eup %1707  ;;  %v1235_v59 = vsub.f32 0.0, %v2188_v51 }
 0x159   : > { %v1216_v13 = vadd.f32 0.2548296, %v1208_v35  ;;  %v1209_v31 = vmul.f32 %v2164_v22, %v1201_v14  ;;  %v1173_v44 = vadd.f32 -1.4531521, %v1165_v6  ;;  %v1710_v29 = vpop.eup %1709 }
 0x15a   : > { %v1214_v18 = vadd.f32 0.2548296, %v1206_v9  ;;  %v1207_v5 = vmul.f32 %v2172_v34, %v1199_v32  ;;  %v1188_v42 = vadd.f32 1.4214138, %v1180_v39  ;;  %v1712_v11 = vpop.eup %1711 }
 0x15b   : > { %v1224_v30 = vmul.f32 %v2149_v60, %v1216_v13  ;;  %v1217_v33 = vadd.f32 0.2548296, %v1209_v31  ;;  %v1170_v60 = vadd.f32 -1.4531521, %v1162_v36  ;;  %v1181_v58 = vmul.f32 %v2203_v26, %v1173_v44 }
 0x15c   : > { %v1222_v38 = vmul.f32 %v2158_v4, %v1214_v18  ;;  %v1215_v4 = vadd.f32 0.2548296, %v1207_v5  ;;  %v1196_v57 = vmul.f32 %v2193_v55, %v1188_v42  ;;  %v2224_v16 = vpop.eup %1713 }
 0x15d   : > { %v1264_v2 = vmul.f32 %v1700_v12, %v1224_v30  ;;  %v1225_v47 = vmul.f32 %v2164_v22, %v1217_v33  ;;  %v1178_v50 = vmul.f32 %v2200_v17, %v1170_v60  ;;  %v1189_v10 = vadd.f32 1.4214138, %v1181_v58  ;;  %v1716_v32 = vpop.eup %1715 }
 0x15e   : > { %v1262_v7 = vmul.f32 %v1706_v37, %v1222_v38  ;;  %v1223_v40 = vmul.f32 %v2172_v34, %v1215_v4  ;;  %v1204_v9 = vadd.f32 -0.28449672, %v1196_v57  ;;  %v1243_v34 = vmul.f32 %v1235_v59, %v2188_v51 }
 0x15f   : > { %v1272_v46 = vsub.f32 1.0, %v1264_v2  ;;  %v1265_v35 = vmul.f32 %v1708_v52, %v1225_v47  ;;  %v1186_v22 = vadd.f32 1.4214138, %v1178_v50  ;;  %v1197_v23 = vmul.f32 %v2203_v26, %v1189_v10  ;;  %v1718_v47 = vpop.eup %1717 }
 0x160   : > { %v1270_v53 = vsub.f32 1.0, %v1262_v7  ;;  %v1263_v13 = vmul.f32 %v1710_v29, %v1223_v40  ;;  %v1163_v39 = vmul.f32 1.0614054, %v2224_v16  ;;  %v1097_v51 = vmul.f32 0.5, %v2104_v20 }
 0x161   : > { %v1280_v3 = vmul.f32 %v1272_v46, %v2137_v63  ;;  %v1273_v12 = vsub.f32 1.0, %v1265_v35  ;;  %v1194_v14 = vmul.f32 %v2200_v17, %v1186_v22  ;;  %v1212_v63 = vmul.f32 %v2193_v55, %v1204_v9 }
 0x162   : > { %v1278_v0 = vmul.f32 %v1270_v53, %v2146_v28  ;;  %v1271_v30 = vsub.f32 1.0, %v1263_v13  ;;  %v1205_v38 = vadd.f32 -0.28449672, %v1197_v23  ;;  %v1171_v5 = vadd.f32 -1.4531521, %v1163_v39 }
 0x163   : > { %v1288_v62 = vadd.f32 1.0, %v1280_v3  ;;  %v1281_v24 = vmul.f32 %v1273_v12, %v2152_v61  ;;  %v1202_v31 = vadd.f32 -0.28449672, %v1194_v14  ;;  %v1220_v37 = vadd.f32 0.2548296, %v1212_v63 }
 0x164   : > { %v1286_v18 = vadd.f32 1.0, %v1278_v0  ;;  %v1213_v33 = vmul.f32 %v2203_v26, %v1205_v38  ;;  %v1256_v44 = vmul.f32 1.442695, %v1243_v34  ;;  %v1124_v52 = vsel %vm1116_vm8, 1.0, %v1785_v43 }
 0x165   : > { %v1296_v28 = vmul.f32 %v1288_v62, %v2133_v15  ;;  %v1289_v6 = vadd.f32 1.0, %v1281_v24  ;;  %v1279_v15 = vmul.f32 %v1271_v30, %v2185_v48  ;;  %v1210_v61 = vmul.f32 %v2200_v17, %v1202_v31 }
 0x166   : > { %v1294_v36 = vmul.f32 %v1286_v18, %v2139_v19  ;;  %v1095_v19 = vmul.f32 0.5, %v2108_v25  ;;  %v1228_v2 = vmul.f32 %v2193_v55, %v1220_v37  ;;  %v1221_v45 = vadd.f32 0.2548296, %v1213_v33 }
 0x167   : > { %1304 = vst [vmem:[%s2233_s6 + $0x10] sm:$0xff] %v1296_v28  ;;  %v1297_v60 = vmul.f32 %v1289_v6, %v1097_v51  ;;  %v1287_v7 = vadd.f32 1.0, %v1279_v15  ;;  %v1218_v42 = vadd.f32 0.2548296, %v1210_v61  ;;  %v1179_v48 = vmul.f32 %v2224_v16, %v1171_v5 }
 0x168   : > { %1302 = vst [vmem:[%s2233_s6] sm:$0xff] %v1294_v36  ;;  %v1268_v20 = vmul.f32 %v1712_v11, %v1228_v2  ;;  %v1229_v4 = vmul.f32 %v2203_v26, %v1221_v45  ;;  %1719 = vpow2.f32 %v1256_v44  ;;  %v1122_v26 = vsel %vm1114_vm9, 1.0, %v1785_v43 }
 0x169   : > { %1305 = vst [vmem:[%s2233_s6 + $0x18] sm:$0xff] %v1297_v60  ;;  %v1295_v46 = vmul.f32 %v1287_v7, %v1095_v19  ;;  %v1226_v25 = vmul.f32 %v2200_v17, %v1218_v42  ;;  %v1187_v50 = vadd.f32 1.4214138, %v1179_v48  ;;  %v1100_v17 = vmul.f32 0.5, %v2118_v49 }
 0x16a   : > { %v1276_v55 = vsub.f32 1.0, %v1268_v20  ;;  %v1269_v57 = vmul.f32 %v1718_v47, %v1229_v4  ;;  %v1098_v9 = vmul.f32 0.5, %v2124_v56  ;;  %v1101_v49 = vmul.f32 0.5, %v2127_v1 }
 0x16b   : > { %1303 = vst [vmem:[%s2233_s6 + $0x8] sm:$0xff] %v1295_v46  ;;  %v1266_v53 = vmul.f32 %v1716_v32, %v1226_v25  ;;  %v1195_v58 = vmul.f32 %v2224_v16, %v1187_v50  ;;  %v1123_v23 = vsel %vm1115_vm11, 1.0, %v1785_v43  ;;  %v1099_v1 = vmul.f32 0.5, %v2168_v27 }
 0x16c   : > { %v1284_v54 = vmul.f32 %v1276_v55, %v1124_v52  ;;  %v1277_v3 = vsub.f32 1.0, %v1269_v57 }
 0x16d   : > { %v1274_v59 = vsub.f32 1.0, %v1266_v53  ;;  %v1203_v35 = vadd.f32 -0.28449672, %v1195_v58 }
 0x16e   : > { %v1292_v29 = vadd.f32 1.0, %v1284_v54  ;;  %v1285_v0 = vmul.f32 %v1277_v3, %v1125_v8 }
 0x16f   : > { %v1282_v40 = vmul.f32 %v1274_v59, %v1122_v26  ;;  %v1211_v21 = vmul.f32 %v2224_v16, %v1203_v35 }
 0x170   : > { %v1300_v22 = vmul.f32 %v1292_v29, %v1100_v17  ;;  %v1293_v11 = vadd.f32 1.0, %v1285_v0 }
 0x171   : > { %v1290_v10 = vadd.f32 1.0, %v1282_v40  ;;  %v1219_v62 = vadd.f32 0.2548296, %v1211_v21 }
 0x172   : > { %1308 = vst [vmem:[%s2233_s6 + $0x30] sm:$0xff] %v1300_v22  ;;  %v1301_v13 = vmul.f32 %v1293_v11, %v1101_v49  ;;  %v1720_v18 = vpop.eup %1719 }
 0x173   : > { %v1298_v12 = vmul.f32 %v1290_v10, %v1098_v9  ;;  %v1227_v14 = vmul.f32 %v2224_v16, %v1219_v62 }
 0x174   : > { %1309 = vst [vmem:[%s2233_s6 + $0x38] sm:$0xff] %v1301_v13 }
 0x175   : > { %1306 = vst [vmem:[%s2233_s6 + $0x20] sm:$0xff] %v1298_v12  ;;  %v1267_v56 = vmul.f32 %v1720_v18, %v1227_v14 }
 0x177   : > { %v1275_v63 = vsub.f32 1.0, %v1267_v56 }
 0x179   : > { %v1283_v34 = vmul.f32 %v1275_v63, %v1123_v23 }
 0x17b   : > { %v1291_v28 = vadd.f32 1.0, %v1283_v34 }
 0x17d   : > { %v1299_v41 = vmul.f32 %v1291_v28, %v1099_v1 }
 0x17f   : > { %1307 = vst [vmem:[%s2233_s6 + $0x28] sm:$0xff] %v1299_v41 }
 0x180   : > { %1734 = shalt.err (!%p1731_p3)
}
 0x181   : > { %s1735_s25 = scalar_lea.hbm %s2271_s11, 1024  ;;  %s1739_s28 = scalar_lea.hbm %s2322_s3, 2048 }
 0x182   : > { %p1736_p4 = scmp.ne.s32.totalorder %s2271_s11, %s1735_s25  ;;  %p1740_p9 = scmp.lt.u32.totalorder %s2271_s11, %s2322_s3 }
 0x183   : > { %p1741_p10 = scmp.lt.u32.totalorder %s1739_s28, %s1735_s25  ;;  %p1743_p12 = scmp.lt.u32.totalorder %s1735_s25, %s2271_s11 }
 0x184   : > { %p1737_p7 = pnand %p1736_p4, %p1847_p5 }
 0x185   : > { %p1742_p11 = por %p1741_p10, %p1740_p9 }
 0x186   : > { %p1738_p8 = pneg %p1737_p7 }
 0x187   : > { %p1744_p13 = por %p1743_p12, %p1742_p11 }
 0x189   : > { %p1745_p0 = pnand %p1744_p13, %p1738_p8 }
 0x18b   : > { %1748 = shalt.err (!%p1745_p0)
}
 0x18c   : > { %s1787_s4 = smov 128   ;;  %s1788_s5 = smov 8  }
 0x18d   : > { %1647 = dma.vmem_to_hbm [thread:$0]  (%p1847_p5), %s2273_s8, 1024, %s2271_s11, %s2278_s17, %s1787_s4, %s1787_s4, %s1788_s5  }
 0x18e PF: > { %p1653_p1 = scmp.ge.s32.totalorder %s1783_s15, 2  ;;  %s1339_s6 = sand.u32 1, %s1771_s12  }
 0x18f   : > { %s1340_s7 = scalar_lea.sflag [#allocation3], %s1339_s6 }
 0x190   : > { %p1650_p2 = pnand %p1653_p1, %p1851_p6 }
 0x192   : > { %1766 = dma.done.wait (!%p1650_p2), %s1340_s7, 1024  }
 0x193   : > { %1768 = vsyncadd (!%p1650_p2), %s1340_s7, 4294966272  ;;  %p13_p3 = scmp.ge.s32.totalorder %s1834_s18, 4   ;;  %s2325_s12 = smov %s1775_s13 }
 0x194   : > { %s2326_s13 = smov %s1779_s14  ;;  %s2327_s14 = smov %s1845_s21 }
 0x195   : > { %s2328_s15 = smov %s1834_s18  ;;  %15 = sbr.rel (!%p13_p3) target bundleno = 3 (0x3), region = 67 }
 0x19c   :  { %1345 = vsyncpa [#allocation3], 1 }
 0x19d   :  { %1347 = vsyncpa [#allocation3 + $0x1], 1 }

</bundles_post_ra>
